<compile_context>
chip_gen: v6e
topology: v6e:2x2x1
jax: 0.10.0
libtpu: 0.0.40
codegen_flags: <defaults>
</compile_context>

<pallas_src>
import functools

import jax
import jax.numpy as jnp
from jax.experimental import pallas as pl
from jax.experimental.pallas import tpu as pltpu

EPS = 1e-5  # torch.nn.LayerNorm default


def _patch_proj_out_kernel(x_ref, g_ref, b_ref, w_ref, bias_ref, o_ref, *,
                           elem_bf16):
    # x_ref: (tm, D) bf16   g_ref/b_ref: (1, D) f32
    # w_ref: (D, Dout_p) bf16   bias_ref: (1, Dout_p) f32   o_ref: (tm, Dout_p)
    x = x_ref[...].astype(jnp.float32)
    d = x.shape[-1]
    inv_d = jnp.float32(1.0 / d)

    # LayerNorm statistics in f32; centered two-pass variance.
    mean = jnp.sum(x, axis=-1, keepdims=True) * inv_d
    xc = x - mean
    var = jnp.sum(xc * xc, axis=-1, keepdims=True) * inv_d
    rstd = jax.lax.rsqrt(var + EPS)

    if elem_bf16:
        # v6e/v7x: bf16 VPU/EUP -> affine + SiLU at 2 elems/lane.
        xn = (xc * rstd).astype(jnp.bfloat16)
        xn = xn * g_ref[...].astype(jnp.bfloat16) \
            + b_ref[...].astype(jnp.bfloat16)
        h = xn * jax.nn.sigmoid(xn)                 # already bf16
    else:
        # v5e: no bf16 VPU/EUP; keep the elementwise chain in f32.
        xn = xc * rstd * g_ref[...] + b_ref[...]
        h = (xn * jax.nn.sigmoid(xn)).astype(jnp.bfloat16)

    # Linear projection: bf16 operands (MXU-native), f32 accumulation.
    y = jnp.dot(h, w_ref[...], preferred_element_type=jnp.float32)
    y = y + bias_ref[...]
    o_ref[...] = y.astype(o_ref.dtype)


def _device_kind():
    try:
        return jax.devices()[0].device_kind.lower()
    except Exception:
        return ""


def _vmem_budget_bytes():
    # Generation-aware scoped-VMEM budget with headroom for Mosaic internal
    # scratch: 48 MiB on 64 MiB parts (v7x), 64 MiB on 128 MiB parts.
    try:
        cap = pltpu.get_tpu_info().vmem_capacity_bytes
    except Exception:
        cap = 64 << 20
    return (48 << 20) if cap <= (64 << 20) else (64 << 20)


def _choose_tm(m, d, d_out_p, out_itemsize, budget, *, prefer_even_grid):
    # Footprint-derived cap: double-buffered x/out tiles plus in-kernel
    # temporaries (f32 x, f32 xc/xn, bf16 h ~ 10 B/elem of D; f32 y on Dout).
    lane_out = max(d_out_p, 128)
    per_row = (2 * d * 2                        # x tile, bf16, double-buffered
               + 2 * lane_out * out_itemsize    # out tile, double-buffered
               + 10 * d                         # in-kernel x / xn / h
               + 4 * lane_out)                  # f32 accumulator y
    resident = 2 * d * lane_out * 2 + 4 * (2 * d + 2 * lane_out) + (1 << 20)
    tm_max = max(16, (budget - resident) // per_row)
    tm_max = int(min(tm_max, 4096, max(m, 16)))
    tm_max = max((tm_max // 16) * 16, 16)

    divisors = [t for t in range(16, min(tm_max, m) + 1, 16) if m % t == 0]
    if not divisors:
        divisors = [t for t in range(8, min(tm_max, m) + 1, 8) if m % t == 0]
    if divisors:
        if prefer_even_grid:
            even = [t for t in divisors if (m // t) % 2 == 0]
            if even:
                return max(even), True
        return max(divisors), True
    # No clean divisor: caller pads the row axis.
    return min(tm_max, ((m + 15) // 16) * 16), False


def patch_proj_out(x, gamma, beta, weight, bias, *, sample_size, patch_size,
                   channels, tm=None, out_dtype=jnp.bfloat16):
    """x: (B, N, D) with N = (sample_size // patch_size)**2.

    Returns an NCHW image of shape (B, channels, sample_size, sample_size),
    matching PyTorch PatchProjOut.forward (out_dtype defaults to bf16 to halve
    writeback + rearrange traffic; pass jnp.float32 for full-width output).
    """
    B, N, D = x.shape
    n_patches = sample_size // patch_size
    assert N == n_patches * n_patches
    d_out = channels * patch_size * patch_size
    assert weight.shape == (D, d_out)
    out_dtype = jnp.dtype(out_dtype)

    gamma = jnp.asarray(gamma, jnp.float32).reshape(1, D)
    beta = jnp.asarray(beta, jnp.float32).reshape(1, D)
    bias = jnp.asarray(bias, jnp.float32).reshape(1, d_out)

    kind = _device_kind()
    multi_tc = ("v7" in kind) or ("7x" in kind)       # two TensorCores / chip
    elem_bf16 = "v5" not in kind                      # v5e: no bf16 VPU/EUP

    M = B * N
    # bf16 activations: kernel is HBM-read bound (~d_out/2 FLOPs/byte), so
    # halving the x bytes is the dominant lever; under jit this cast fuses
    # into the producer of x.
    x2d = x.reshape(M, D).astype(jnp.bfloat16)

    # Lane-dense output padding (only worthwhile when d_out is already wide).
    if d_out >= 128 and d_out % 128 != 0:
        d_out_p = ((d_out + 127) // 128) * 128
    else:
        d_out_p = d_out

    w_bf16 = weight.astype(jnp.bfloat16)
    bias_p = bias
    if d_out_p != d_out:
        w_bf16 = jnp.pad(w_bf16, ((0, 0), (0, d_out_p - d_out)))
        bias_p = jnp.pad(bias, ((0, 0), (0, d_out_p - d_out)))

    budget = _vmem_budget_bytes()
    if tm is None:
        tm, _ = _choose_tm(M, D, d_out_p, out_dtype.itemsize, budget,
                           prefer_even_grid=multi_tc)

    grid_m = -(-M // tm)
    Mp = grid_m * tm
    if Mp != M:
        # TODO(synk): replace this pad with a masked partial store on the last
        # grid step; divisor-based tm selection avoids it for the common
        # multiple-of-8 token counts, so this path is rarely taken.
        x2d = jnp.pad(x2d, ((0, Mp - M), (0, 0)))

    y2d = pl.pallas_call(
        functools.partial(_patch_proj_out_kernel, elem_bf16=elem_bf16),
        out_shape=jax.ShapeDtypeStruct((Mp, d_out_p), out_dtype),
        grid_spec=pltpu.PrefetchScalarGridSpec(
            num_scalar_prefetch=0,
            grid=(grid_m,),
            in_specs=[
                pl.BlockSpec((tm, D), lambda i: (i, 0)),
                pl.BlockSpec((1, D), lambda i: (0, 0)),
                pl.BlockSpec((1, D), lambda i: (0, 0)),
                pl.BlockSpec((D, d_out_p), lambda i: (0, 0)),   # resident W
                pl.BlockSpec((1, d_out_p), lambda i: (0, 0)),
            ],
            out_specs=pl.BlockSpec((tm, d_out_p), lambda i: (i, 0)),
        ),
        compiler_params=pltpu.CompilerParams(
            dimension_semantics=("parallel",),
            vmem_limit_bytes=int(budget)),
    )(x2d, gamma, beta, w_bf16, bias_p)

    if Mp != M:
        y2d = y2d[:M]
    if d_out_p != d_out:
        y2d = y2d[:, :d_out]

    # einops: 'b (h w) (ph pw c) -> b c (h ph) (w pw)'  (layout glue on the
    # small d_out-wide tensor; see header comment for why it is not fused).
    y = y2d.reshape(B, n_patches, n_patches, patch_size, patch_size, channels)
    y = jnp.transpose(y, (0, 5, 1, 3, 2, 4))
    return y.reshape(B, channels, n_patches * patch_size,
                     n_patches * patch_size)


def _reference(x, gamma, beta, weight, bias, *, sample_size, patch_size,
               channels, out_dtype=jnp.bfloat16):
    # Mirrors the module semantics with the kernel's precision choices
    # (bf16 input rounding, bf16-operand / f32-accumulate matmul).
    B, N, D = x.shape
    n_patches = sample_size // patch_size
    xb = x.astype(jnp.bfloat16).astype(jnp.float32)
    mean = jnp.mean(xb, axis=-1, keepdims=True)
    var = jnp.mean((xb - mean) ** 2, axis=-1, keepdims=True)
    xn = (xb - mean) * jax.lax.rsqrt(var + EPS) * gamma.reshape(1, 1, D) \
        + beta.reshape(1, 1, D)
    h = xn * jax.nn.sigmoid(xn)
    y = jnp.dot(h.astype(jnp.bfloat16), weight.astype(jnp.bfloat16),
                preferred_element_type=jnp.float32) + bias.reshape(1, 1, -1)
    y = y.astype(out_dtype)
    y = y.reshape(B, n_patches, n_patches, patch_size, patch_size, channels)
    y = jnp.transpose(y, (0, 5, 1, 3, 2, 4))
    return y.reshape(B, channels, n_patches * patch_size,
                     n_patches * patch_size)


if __name__ == "__main__":
    # Small config consistent with the module:
    #   sample_size=16, patch_size=2 -> n_patches=8 -> N=64 tokens
    #   d_model=32, channels=3 -> out features = 3*2*2 = 12
    B, sample_size, patch_size, channels, d_model = 2, 16, 2, 3, 32
    n_patches = sample_size // patch_size
    N = n_patches * n_patches
    d_out = channels * patch_size * patch_size

    key = jax.random.PRNGKey(0)
    kx, kg, kb, kw, kbias = jax.random.split(key, 5)

    x = jax.random.normal(kx, (B, N, d_model), dtype=jnp.float32)
    gamma = 1.0 + 0.02 * jax.random.normal(kg, (1, d_model), dtype=jnp.float32)
    beta = 0.02 * jax.random.normal(kb, (1, d_model), dtype=jnp.float32)
    weight = jax.random.normal(kw, (d_model, d_out), dtype=jnp.float32) \
        * (1.0 / jnp.sqrt(d_model))
    bias = 0.01 * jax.random.normal(kbias, (1, d_out), dtype=jnp.float32)

    out = patch_proj_out(x, gamma, beta, weight, bias,
                         sample_size=sample_size, patch_size=patch_size,
                         channels=channels)
    out = jax.block_until_ready(out)

    ref = _reference(x, gamma, beta, weight, bias,
                     sample_size=sample_size, patch_size=patch_size,
                     channels=channels)
    assert out.shape == (B, channels, sample_size, sample_size)
    # Tolerance covers bf16 input/activation rounding and the bf16 matmul.
    assert jnp.allclose(out.astype(jnp.float32), ref.astype(jnp.float32),
                        atol=3e-2, rtol=3e-2)
    print("KERNEL_OK")
</pallas_src>

<mosaic_0001>
module attributes {stable_mosaic.version = 11 : i64} {
  func.func @_patch_proj_out_kernel(%arg0: i32, %arg1: memref<128x32xbf16, #tpu.memory_space<vmem>>, %arg2: memref<1x32xf32, #tpu.memory_space<vmem>>, %arg3: memref<1x32xf32, #tpu.memory_space<vmem>>, %arg4: memref<32x12xbf16, #tpu.memory_space<vmem>>, %arg5: memref<1x12xf32, #tpu.memory_space<vmem>>, %arg6: memref<128x12xbf16, #tpu.memory_space<vmem>>) attributes {dimension_semantics = [#tpu.dimension_semantics<parallel>], iteration_bounds = array<i64: 1>, scalar_prefetch = 0 : i64, scratch_operands = 0 : i64, tpu.core_type = #tpu.core_type<tc>, window_params = [{transform_indices = @transform_0, window_bounds = array<i64: 128, 32>}, {pipeline_mode = #tpu.pipeline_mode<synchronous>, transform_indices = @transform_1, window_bounds = array<i64: 1, 32>}, {pipeline_mode = #tpu.pipeline_mode<synchronous>, transform_indices = @transform_2, window_bounds = array<i64: 1, 32>}, {pipeline_mode = #tpu.pipeline_mode<synchronous>, transform_indices = @transform_3, window_bounds = array<i64: 32, 12>}, {pipeline_mode = #tpu.pipeline_mode<synchronous>, transform_indices = @transform_4, window_bounds = array<i64: 1, 12>}, {transform_indices = @transform_5, window_bounds = array<i64: 128, 12>}]} {
    %c0 = arith.constant 0 : index
    %c0_0 = arith.constant 0 : index
    %0 = vector.load %arg1[%c0, %c0_0] : memref<128x32xbf16, #tpu.memory_space<vmem>>, vector<128x32xbf16>
    %1 = arith.extf %0 : vector<128x32xbf16> to vector<128x32xf32>
    %cst = arith.constant dense<0.000000e+00> : vector<128xf32>
    %2 = vector.multi_reduction <add>, %1, %cst [1] : vector<128x32xf32> to vector<128xf32>
    %3 = vector.shape_cast %2 : vector<128xf32> to vector<128x1xf32>
    %cst_1 = arith.constant 3.125000e-02 : f32
    %4 = vector.broadcast %cst_1 : f32 to vector<128x1xf32>
    %5 = arith.mulf %3, %4 : vector<128x1xf32>
    %6 = vector.broadcast %5 : vector<128x1xf32> to vector<128x32xf32>
    %7 = arith.subf %1, %6 : vector<128x32xf32>
    %8 = arith.mulf %7, %7 : vector<128x32xf32>
    %cst_2 = arith.constant dense<0.000000e+00> : vector<128xf32>
    %9 = vector.multi_reduction <add>, %8, %cst_2 [1] : vector<128x32xf32> to vector<128xf32>
    %10 = vector.shape_cast %9 : vector<128xf32> to vector<128x1xf32>
    %cst_3 = arith.constant 3.125000e-02 : f32
    %11 = vector.broadcast %cst_3 : f32 to vector<128x1xf32>
    %12 = arith.mulf %10, %11 : vector<128x1xf32>
    %cst_4 = arith.constant 9.99999974E-6 : f32
    %13 = vector.broadcast %cst_4 : f32 to vector<128x1xf32>
    %14 = arith.addf %12, %13 : vector<128x1xf32>
    %15 = math.rsqrt %14 : vector<128x1xf32>
    %16 = vector.broadcast %15 : vector<128x1xf32> to vector<128x32xf32>
    %17 = arith.mulf %7, %16 : vector<128x32xf32>
    %18 = arith.truncf %17 : vector<128x32xf32> to vector<128x32xbf16>
    %c0_5 = arith.constant 0 : index
    %c0_6 = arith.constant 0 : index
    %19 = vector.load %arg2[%c0_5, %c0_6] : memref<1x32xf32, #tpu.memory_space<vmem>>, vector<1x32xf32>
    %20 = arith.truncf %19 : vector<1x32xf32> to vector<1x32xbf16>
    %21 = vector.broadcast %20 : vector<1x32xbf16> to vector<128x32xbf16>
    %22 = arith.mulf %18, %21 : vector<128x32xbf16>
    %c0_7 = arith.constant 0 : index
    %c0_8 = arith.constant 0 : index
    %23 = vector.load %arg3[%c0_7, %c0_8] : memref<1x32xf32, #tpu.memory_space<vmem>>, vector<1x32xf32>
    %24 = arith.truncf %23 : vector<1x32xf32> to vector<1x32xbf16>
    %25 = vector.broadcast %24 : vector<1x32xbf16> to vector<128x32xbf16>
    %26 = arith.addf %22, %25 : vector<128x32xbf16>
    %27 = arith.negf %26 : vector<128x32xbf16>
    %28 = math.exp %27 : vector<128x32xbf16>
    %cst_9 = arith.constant 1.000000e+00 : bf16
    %29 = vector.broadcast %cst_9 : bf16 to vector<128x32xbf16>
    %30 = arith.addf %29, %28 : vector<128x32xbf16>
    %31 = arith.divf %29, %30 : vector<128x32xbf16>
    %32 = arith.mulf %26, %31 : vector<128x32xbf16>
    %c0_10 = arith.constant 0 : index
    %c0_11 = arith.constant 0 : index
    %33 = vector.load %arg4[%c0_10, %c0_11] : memref<32x12xbf16, #tpu.memory_space<vmem>>, vector<32x12xbf16>
    %cst_12 = arith.constant dense<0.000000e+00> : vector<128x12xf32>
    %34 = tpu.matmul %32, %33, %cst_12 {dimension_numbers = #tpu.dot_dimension_numbers<[1], [0], [0], [1], [0, 0, 1, 1], [], []>} : vector<128x32xbf16>, vector<32x12xbf16>, vector<128x12xf32> -> vector<128x12xf32>
    %c0_13 = arith.constant 0 : index
    %c0_14 = arith.constant 0 : index
    %35 = vector.load %arg5[%c0_13, %c0_14] : memref<1x12xf32, #tpu.memory_space<vmem>>, vector<1x12xf32>
    %36 = vector.broadcast %35 : vector<1x12xf32> to vector<128x12xf32>
    %37 = arith.addf %34, %36 : vector<128x12xf32>
    %38 = arith.truncf %37 : vector<128x12xf32> to vector<128x12xbf16>
    %c0_15 = arith.constant 0 : index
    %c0_16 = arith.constant 0 : index
    %39 = vector.load %arg6[%c0_15, %c0_16] : memref<128x12xbf16, #tpu.memory_space<vmem>>, vector<128x12xbf16>
    tpu.vector_store %arg6[%c0_15, %c0_16], %38 {strides = array<i32>} : memref<128x12xbf16, #tpu.memory_space<vmem>>, vector<128x12xbf16>,
    return
  }
  func.func @transform_0(%arg0: i32) -> (i32, i32) {
    %c0_i32 = arith.constant 0 : i32
    %c0_i32_0 = arith.constant 0 : i32
    return %arg0, %c0_i32 : i32, i32
  }
  func.func @transform_1(%arg0: i32) -> (i32, i32) {
    %c0_i32 = arith.constant 0 : i32
    %c0_i32_0 = arith.constant 0 : i32
    %c0_i32_1 = arith.constant 0 : i32
    return %c0_i32, %c0_i32_0 : i32, i32
  }
  func.func @transform_2(%arg0: i32) -> (i32, i32) {
    %c0_i32 = arith.constant 0 : i32
    %c0_i32_0 = arith.constant 0 : i32
    %c0_i32_1 = arith.constant 0 : i32
    return %c0_i32, %c0_i32_0 : i32, i32
  }
  func.func @transform_3(%arg0: i32) -> (i32, i32) {
    %c0_i32 = arith.constant 0 : i32
    %c0_i32_0 = arith.constant 0 : i32
    %c0_i32_1 = arith.constant 0 : i32
    return %c0_i32, %c0_i32_0 : i32, i32
  }
  func.func @transform_4(%arg0: i32) -> (i32, i32) {
    %c0_i32 = arith.constant 0 : i32
    %c0_i32_0 = arith.constant 0 : i32
    %c0_i32_1 = arith.constant 0 : i32
    return %c0_i32, %c0_i32_0 : i32, i32
  }
  func.func @transform_5(%arg0: i32) -> (i32, i32) {
    %c0_i32 = arith.constant 0 : i32
    %c0_i32_0 = arith.constant 0 : i32
    return %arg0, %c0_i32 : i32, i32
  }
}

</mosaic_0001>

<bundles_post_ra>
// kernel: tpu_custom_call.1
= control target key start
LH: loop header
LB: loop body
LE: loop exit
PB: predicated region body
PF: predicated region fallthrough
CT: control target
= control target key end

     0   :  { %vm54_vm0 = vcmask 261120   ;;  %vm577_vm1 = vcmask 93184   ;;  %s1187_s0 = inlined_call_operand.vmem [shape: bf16[128,32], index: 0, kind: input, shape index: {}]   ;;  %s1188_s3 = inlined_call_operand.vmem [shape: bf16[32,12], index: 3, kind: input, shape index: {}]   ;;  %s1189_s1 = inlined_call_operand.vmem [shape: f32[1,32], index: 1, kind: input, shape index: {}]   ;;  %s1190_s2 = inlined_call_operand.vmem [shape: f32[1,32], index: 2, kind: input, shape index: {}]   ;;  %s1191_s4 = inlined_call_operand.vmem [shape: f32[1,12], index: 4, kind: input, shape index: {}]   ;;  %s1192_s5 = inlined_call_operand.vmem [shape: bf16[128,12], index: 5, kind: output, shape index: {}]  }
   0x1   :  { %v821_v0 = vld [vmem:[%s1187_s0] sm:$0xff]   ;;  %v835_v6 = vld [vmem:[%s1187_s0 + $0x8] sm:$0xff]   ;;  %v863_v18 = vld [vmem:[%s1187_s0 + $0x10] sm:$0xff]  }
   0x2   :  { %v826_v1 = vld [vmem:[%s1187_s0 + $0x20] sm:$0xff]   ;;  %v651_v2 = vunpack.c.l.bf16 %v821_v0  ;;  %v652_v4 = vunpack.c.h.bf16 %v821_v0  ;;  %v655_v11 = vunpack.c.l.bf16 %v835_v6  ;;  %v656_v12 = vunpack.c.h.bf16 %v835_v6  ;;  %v850_v13 = vld [vmem:[%s1187_s0 + $0x28] sm:$0xff]   ;;  %v876_v23 = vld [vmem:[%s1187_s0 + $0x30] sm:$0xff]  }
   0x3   :  { %v667_v3 = vunpack.c.l.bf16 %v826_v1  ;;  %v668_v5 = vunpack.c.h.bf16 %v826_v1  ;;  %v671_v16 = vunpack.c.l.bf16 %v850_v13  ;;  %v672_v17 = vunpack.c.h.bf16 %v850_v13  ;;  %v889_v28 = vld [vmem:[%s1187_s0 + $0x18] sm:$0xff]  }
   0x4   :  { %v55_v7 = vsel %vm54_vm0, %v651_v2, 0.0  ;;  %v58_v9 = vsel %vm54_vm0, %v652_v4, 0.0  ;;  %v61_v14 = vsel %vm54_vm0, %v655_v11, 0.0  ;;  %v64_v15 = vsel %vm54_vm0, %v656_v12, 0.0  ;;  %v902_v33 = vld [vmem:[%s1187_s0 + $0x38] sm:$0xff]  }
   0x5   :  { %v79_v8 = vsel %vm54_vm0, %v667_v3, 0.0  ;;  %56 = vadd.xlane.f32.xlu0 %v55_v7  ;;  %v82_v10 = vsel %vm54_vm0, %v668_v5, 0.0  ;;  %v85_v19 = vsel %vm54_vm0, %v671_v16, 0.0  ;;  %v88_v20 = vsel %vm54_vm0, %v672_v17, 0.0 }
   0x6   :  { %80 = vadd.xlane.f32.xlu1 %v79_v8  ;;  %v659_v21 = vunpack.c.l.bf16 %v863_v18  ;;  %v660_v22 = vunpack.c.h.bf16 %v863_v18  ;;  %v675_v26 = vunpack.c.l.bf16 %v876_v23  ;;  %v676_v27 = vunpack.c.h.bf16 %v876_v23 }
   0x7   :  { %v663_v31 = vunpack.c.l.bf16 %v889_v28  ;;  %v664_v32 = vunpack.c.h.bf16 %v889_v28  ;;  %v679_v36 = vunpack.c.l.bf16 %v902_v33  ;;  %v680_v37 = vunpack.c.h.bf16 %v902_v33 }
   0x8   :  { %v67_v24 = vsel %vm54_vm0, %v659_v21, 0.0  ;;  %v70_v25 = vsel %vm54_vm0, %v660_v22, 0.0  ;;  %v91_v29 = vsel %vm54_vm0, %v675_v26, 0.0  ;;  %v94_v30 = vsel %vm54_vm0, %v676_v27, 0.0 }
   0x9   :  { %59 = vadd.xlane.f32.xlu0 %v58_v9  ;;  %v73_v34 = vsel %vm54_vm0, %v663_v31, 0.0  ;;  %v76_v35 = vsel %vm54_vm0, %v664_v32, 0.0  ;;  %v97_v38 = vsel %vm54_vm0, %v679_v36, 0.0  ;;  %v100_v39 = vsel %vm54_vm0, %v680_v37, 0.0 }
   0xa   :  { %83 = vadd.xlane.f32.xlu1 %v82_v10 }
   0xd   :  { %62 = vadd.xlane.f32.xlu0 %v61_v14 }
   0xe   :  { %65 = vadd.xlane.f32.xlu1 %v64_v15 }
  0x11   :  { %86 = vadd.xlane.f32.xlu0 %v85_v19 }
  0x12   :  { %89 = vadd.xlane.f32.xlu1 %v88_v20 }
  0x15   :  { %68 = vadd.xlane.f32.xlu0 %v67_v24 }
  0x16   :  { %71 = vadd.xlane.f32.xlu1 %v70_v25 }
  0x19   :  { %92 = vadd.xlane.f32.xlu0 %v91_v29 }
  0x1a   :  { %95 = vadd.xlane.f32.xlu1 %v94_v30 }
  0x1d   :  { %74 = vadd.xlane.f32.xlu0 %v73_v34 }
  0x1e   :  { %77 = vadd.xlane.f32.xlu1 %v76_v35 }
  0x21   :  { %98 = vadd.xlane.f32.xlu0 %v97_v38 }
  0x22   :  { %101 = vadd.xlane.f32.xlu1 %v100_v39 }
  0x8e   :  { %v57_v40 = vpop.xlane.xlu0 %56 }
  0x8f   :  { %v81_v41 = vpop.xlane.xlu1 %80  ;;  %v103_v42 = vmul.f32 0.03125, %v57_v40 }
  0x90   :  { %v111_v43 = vmul.f32 0.03125, %v81_v41 }
  0x91   :  { %v918_v44 = vsub.f32 %v651_v2, %v103_v42 }
  0x92   :  { %v920_v45 = vsub.f32 %v667_v3, %v111_v43  ;;  %v60_v46 = vpop.xlane.xlu0 %59 }
  0x93   :  { %v84_v47 = vpop.xlane.xlu1 %83  ;;  %v104_v48 = vmul.f32 0.03125, %v60_v46  ;;  %v135_v50 = vmul.f32 %v918_v44, %v918_v44 }
  0x94   :  { %v112_v49 = vmul.f32 0.03125, %v84_v47  ;;  %v143_v51 = vmul.f32 %v920_v45, %v920_v45 }
  0x95   :  { %v928_v52 = vsub.f32 %v652_v4, %v104_v48  ;;  %v151_v54 = vsel %vm54_vm0, %v135_v50, 0.0 }
  0x96   :  { %v932_v53 = vsub.f32 %v668_v5, %v112_v49  ;;  %152 = vadd.xlane.f32.xlu0 %v151_v54  ;;  %v63_v55 = vpop.xlane.xlu0 %62  ;;  %v175_v57 = vsel %vm54_vm0, %v143_v51, 0.0 }
  0x97   :  { %v66_v56 = vpop.xlane.xlu1 %65  ;;  %v105_v58 = vmul.f32 0.03125, %v63_v55  ;;  %v136_v60 = vmul.f32 %v928_v52, %v928_v52 }
  0x98   :  { %v106_v59 = vmul.f32 0.03125, %v66_v56  ;;  %v144_v61 = vmul.f32 %v932_v53, %v932_v53 }
  0x99   :  { %v942_v62 = vsub.f32 %v655_v11, %v105_v58  ;;  %v154_v0 = vsel %vm54_vm0, %v136_v60, 0.0 }
  0x9a   :  { %v946_v63 = vsub.f32 %v656_v12, %v106_v59  ;;  %176 = vadd.xlane.f32.xlu0 %v175_v57  ;;  %155 = vadd.xlane.f32.xlu1 %v154_v0  ;;  %v87_v1 = vpop.xlane.xlu0 %86  ;;  %v178_v3 = vsel %vm54_vm0, %v144_v61, 0.0 }
  0x9b   :  { %v90_v2 = vpop.xlane.xlu1 %89  ;;  %v113_v4 = vmul.f32 0.03125, %v87_v1  ;;  %v137_v7 = vmul.f32 %v942_v62, %v942_v62 }
  0x9c   :  { %v114_v5 = vmul.f32 0.03125, %v90_v2  ;;  %v138_v8 = vmul.f32 %v946_v63, %v946_v63 }
  0x9d   :  { %v956_v6 = vsub.f32 %v671_v16, %v113_v4  ;;  %v157_v10 = vsel %vm54_vm0, %v137_v7, 0.0 }
  0x9e   :  { %v960_v9 = vsub.f32 %v672_v17, %v114_v5  ;;  %179 = vadd.xlane.f32.xlu1 %v178_v3  ;;  %158 = vadd.xlane.f32.xlu0 %v157_v10  ;;  %v69_v11 = vpop.xlane.xlu0 %68  ;;  %v160_v14 = vsel %vm54_vm0, %v138_v8, 0.0 }
  0x9f   :  { %v72_v12 = vpop.xlane.xlu1 %71  ;;  %v107_v15 = vmul.f32 0.03125, %v69_v11  ;;  %v145_v20 = vmul.f32 %v956_v6, %v956_v6 }
  0xa0   :  { %v108_v19 = vmul.f32 0.03125, %v72_v12  ;;  %v146_v16 = vmul.f32 %v960_v9, %v960_v9 }
  0xa1   :  { %v970_v13 = vsub.f32 %v659_v21, %v107_v15  ;;  %v181_v24 = vsel %vm54_vm0, %v145_v20, 0.0 }
  0xa2   :  { %v974_v17 = vsub.f32 %v660_v22, %v108_v19  ;;  %161 = vadd.xlane.f32.xlu1 %v160_v14  ;;  %182 = vadd.xlane.f32.xlu0 %v181_v24  ;;  %v93_v25 = vpop.xlane.xlu0 %92  ;;  %v184_v30 = vsel %vm54_vm0, %v146_v16, 0.0  ;;  %v276_v19 = vlaneseq  ;;  %v271_v24 = vld [vmem:[%s1189_s1] sm:$0x1] }
  0xa3   :  { %v96_v29 = vpop.xlane.xlu1 %95  ;;  %v115_v34 = vmul.f32 0.03125, %v93_v25  ;;  %v139_v38 = vmul.f32 %v970_v13, %v970_v13 }
  0xa4   :  { %v116_v35 = vmul.f32 0.03125, %v96_v29  ;;  %v140_v21 = vmul.f32 %v974_v17, %v974_v17 }
  0xa5   :  { %v984_v18 = vsub.f32 %v675_v26, %v115_v34  ;;  %v163_v39 = vsel %vm54_vm0, %v139_v38, 0.0  ;;  %v272_v38 = vpack.c.bf16 %v271_v24, %v271_v24 }
  0xa6   :  { %v988_v22 = vsub.f32 %v676_v27, %v116_v35  ;;  %185 = vadd.xlane.f32.xlu1 %v184_v30  ;;  %164 = vadd.xlane.f32.xlu0 %v163_v39  ;;  %v75_v40 = vpop.xlane.xlu0 %74  ;;  %v166_v42 = vsel %vm54_vm0, %v140_v21, 0.0  ;;  %v288_v35 = vld [vmem:[%s1190_s2] sm:$0x1]  ;;  %v277_v21 = vshrl.u32 %v276_v19, 7 }
  0xa7   :  { %v78_v41 = vpop.xlane.xlu1 %77  ;;  %v109_v43 = vmul.f32 0.03125, %v75_v40  ;;  %v147_v47 = vmul.f32 %v984_v18, %v984_v18 }
  0xa8   :  { %v110_v46 = vmul.f32 0.03125, %v78_v41  ;;  %v148_v26 = vmul.f32 %v988_v22, %v988_v22 }
  0xa9   :  { %v998_v23 = vsub.f32 %v663_v31, %v109_v43  ;;  %v187_v48 = vsel %vm54_vm0, %v147_v47, 0.0  ;;  %v289_v43 = vpack.c.bf16 %v288_v35, %v288_v35 }
  0xaa   :  { %v1002_v27 = vsub.f32 %v664_v32, %v110_v46  ;;  %167 = vadd.xlane.f32.xlu1 %v166_v42  ;;  %188 = vadd.xlane.f32.xlu0 %v187_v48  ;;  %v99_v49 = vpop.xlane.xlu0 %98  ;;  %v190_v51 = vsel %vm54_vm0, %v148_v26, 0.0  ;;  %v274_v26 = vpack.i.b16 %v272_v38, %v272_v38  ;;  %v278_v48 = vsub.s32 0, %v277_v21 }
  0xab   :  { %v102_v50 = vpop.xlane.xlu1 %101  ;;  %v117_v54 = vmul.f32 0.03125, %v99_v49  ;;  %v141_v56 = vmul.f32 %v998_v23, %v998_v23 }
  0xac   :  { %v118_v55 = vmul.f32 0.03125, %v102_v50  ;;  %v142_v31 = vmul.f32 %v1002_v27, %v1002_v27 }
  0xad   :  { %v1012_v28 = vsub.f32 %v679_v36, %v117_v54  ;;  %v169_v57 = vsel %vm54_vm0, %v141_v56, 0.0  ;;  %v722_v36 = vld [vmem:[%s1188_s3 + $0x8] sm:$0xff]   ;;  %v291_v56 = vpack.i.b16 %v289_v43, %v289_v43 }
  0xae   :  { %v1016_v32 = vsub.f32 %v680_v37, %v118_v55  ;;  %191 = vadd.xlane.f32.xlu1 %v190_v51  ;;  %170 = vadd.xlane.f32.xlu0 %v169_v57  ;;  %v172_v58 = vsel %vm54_vm0, %v142_v31, 0.0  ;;  %v723_v37 = vld [vmem:[%s1188_s3] sm:$0xff]  }
  0xaf   :  { %v149_v59 = vmul.f32 %v1012_v28, %v1012_v28  ;;  %698 = vmatprep.subr.bf16.mxu0 %v722_v36  ;;  %718 = vmatprep.subr.bf16.mxu1 %v722_v36 }
  0xb0   :  { %v150_v60 = vmul.f32 %v1016_v32, %v1016_v32  ;;  %699 = vmatpush3.bf16.msra.mxu0 %v722_v36  ;;  %720 = vmatpush3.bf16.msra.mxu1 %v722_v36 }
  0xb1   :  { %v193_v61 = vsel %vm54_vm0, %v149_v59, 0.0  ;;  %700 = vmatprep.subr.bf16.mxu0 %v723_v37  ;;  %719 = vmatprep.subr.bf16.mxu1 %v723_v37 }
  0xb2   :  { %173 = vadd.xlane.f32.xlu1 %v172_v58  ;;  %194 = vadd.xlane.f32.xlu0 %v193_v61  ;;  %v196_v33 = vsel %vm54_vm0, %v150_v60, 0.0  ;;  %v1039_v60 = vrot.slane %v274_v26, %v278_v48 }
  0xb4   :  { %701 = vmatpush3.bf16.msra.mxu0 %v723_v37  ;;  %721 = vmatpush3.bf16.msra.mxu1 %v723_v37 }
  0xb6   :  { %197 = vadd.xlane.f32.xlu1 %v196_v33 }
 0x11f   :  { %v153_v0 = vpop.xlane.xlu0 %152 }
 0x120   :  { %v199_v1 = vmul.f32 0.03125, %v153_v0 }
 0x122   :  { %v215_v2 = vadd.f32 1e-05, %v199_v1  ;;  %v1042_v1 = vrot.slane %v291_v56, %v278_v48 }
 0x123   :  { %v156_v3 = vpop.xlane.xlu1 %155  ;;  %v177_v4 = vpop.xlane.xlu0 %176 }
 0x124   :  { %v200_v5 = vmul.f32 0.03125, %v156_v3  ;;  %v207_v7 = vmul.f32 0.03125, %v177_v4  ;;  %724 = vrsqrt.f32 %v215_v2 }
 0x126   :  { %v216_v8 = vadd.f32 1e-05, %v200_v5  ;;  %v223_v10 = vadd.f32 1e-05, %v207_v7 }
 0x127   :  { %v180_v11 = vpop.xlane.xlu1 %179  ;;  %v159_v12 = vpop.xlane.xlu0 %158 }
 0x128   :  { %726 = vrsqrt.f32 %v216_v8  ;;  %v208_v14 = vmul.f32 0.03125, %v180_v11  ;;  %v201_v15 = vmul.f32 0.03125, %v159_v12 }
 0x129   :  { %728 = vrsqrt.f32 %v223_v10 }
 0x12a   :  { %v224_v20 = vadd.f32 1e-05, %v208_v14  ;;  %v217_v16 = vadd.f32 1e-05, %v201_v15 }
 0x12b   :  { %v162_v25 = vpop.xlane.xlu1 %161  ;;  %v183_v29 = vpop.xlane.xlu0 %182 }
 0x12c   :  { %730 = vrsqrt.f32 %v224_v20  ;;  %v202_v30 = vmul.f32 0.03125, %v162_v25  ;;  %v209_v34 = vmul.f32 0.03125, %v183_v29 }
 0x12d   :  { %732 = vrsqrt.f32 %v217_v16 }
 0x12e   :  { %v218_v39 = vadd.f32 1e-05, %v202_v30  ;;  %v225_v40 = vadd.f32 1e-05, %v209_v34 }
 0x12f   :  { %v186_v41 = vpop.xlane.xlu1 %185  ;;  %v165_v42 = vpop.xlane.xlu0 %164 }
 0x130   :  { %734 = vrsqrt.f32 %v218_v39  ;;  %v210_v46 = vmul.f32 0.03125, %v186_v41  ;;  %v203_v47 = vmul.f32 0.03125, %v165_v42 }
 0x131   :  { %736 = vrsqrt.f32 %v225_v40  ;;  %v725_v49 = vpop.eup %724 }
 0x132   :  { %v226_v50 = vadd.f32 1e-05, %v210_v46  ;;  %v219_v51 = vadd.f32 1e-05, %v203_v47  ;;  %v247_v59 = vmul.f32 %v725_v49, %v918_v44 }
 0x133   :  { %v168_v54 = vpop.xlane.xlu1 %167  ;;  %v189_v55 = vpop.xlane.xlu0 %188 }
 0x134   :  { %738 = vrsqrt.f32 %v226_v50  ;;  %v204_v31 = vmul.f32 0.03125, %v168_v54  ;;  %v211_v57 = vmul.f32 0.03125, %v189_v55 }
 0x135   :  { %v727_v58 = vpop.eup %726  ;;  %740 = vrsqrt.f32 %v219_v51 }
 0x136   :  { %v220_v61 = vadd.f32 1e-05, %v204_v31  ;;  %v227_v33 = vadd.f32 1e-05, %v211_v57  ;;  %v248_v36 = vmul.f32 %v727_v58, %v928_v52  ;;  %v729_v2 = vpop.eup %728 }
 0x137   :  { %v192_v37 = vpop.xlane.xlu1 %191  ;;  %v171_v0 = vpop.xlane.xlu0 %170  ;;  %v255_v15 = vmul.f32 %v729_v2, %v920_v45 }
 0x138   :  { %742 = vrsqrt.f32 %v220_v61  ;;  %v212_v3 = vmul.f32 0.03125, %v192_v37  ;;  %v205_v4 = vmul.f32 0.03125, %v171_v0  ;;  %v263_v5 = vpack.c.bf16 %v248_v36, %v247_v59 }
 0x139   :  { %v731_v7 = vpop.eup %730  ;;  %744 = vrsqrt.f32 %v227_v33 }
 0x13a   :  { %v733_v8 = vpop.eup %732  ;;  %v228_v44 = vadd.f32 1e-05, %v212_v3  ;;  %v221_v10 = vadd.f32 1e-05, %v205_v4  ;;  %v280_v11 = vmul.bf16 %v1039_v60, %v263_v5  ;;  %v256_v12 = vmul.f32 %v731_v7, %v932_v53 }
 0x13b   :  { %v174_v14 = vpop.xlane.xlu1 %173  ;;  %v195_v52 = vpop.xlane.xlu0 %194  ;;  %v249_v29 = vmul.f32 %v733_v8, %v942_v62 }
 0x13c   :  { %746 = vrsqrt.f32 %v228_v44  ;;  %v206_v19 = vmul.f32 0.03125, %v174_v14  ;;  %v213_v20 = vmul.f32 0.03125, %v195_v52  ;;  %v1048_v16 = vadd.bf16 %v1042_v1, %v280_v11 }
 0x13d   :  { %v735_v24 = vpop.eup %734  ;;  %748 = vrsqrt.f32 %v221_v10  ;;  %v267_v25 = vpack.c.bf16 %v256_v12, %v255_v15 }
 0x13e   :  { %v737_v30 = vpop.eup %736  ;;  %v222_v34 = vadd.f32 1e-05, %v206_v19  ;;  %v229_v35 = vadd.f32 1e-05, %v213_v20  ;;  %v598_v53 = vmul.bf16 3216621497, %v1048_v16  ;;  %v250_v38 = vmul.f32 %v735_v24, %v946_v63 }
 0x13f   :  { %v198_v21 = vpop.xlane.xlu1 %197  ;;  %v284_v45 = vmul.bf16 %v1039_v60, %v267_v25  ;;  %v257_v62 = vmul.f32 %v737_v30, %v956_v6 }
 0x140   :  { %750 = vrsqrt.f32 %v222_v34  ;;  %v214_v39 = vmul.f32 0.03125, %v198_v21  ;;  %v264_v40 = vpack.c.bf16 %v250_v38, %v249_v29 }
 0x141   :  { %v739_v41 = vpop.eup %738  ;;  %752 = vrsqrt.f32 %v229_v35  ;;  %v1055_v42 = vadd.bf16 %v1042_v1, %v284_v45 }
 0x142   :  { %v230_v43 = vadd.f32 1e-05, %v214_v39  ;;  %754 = vpow.bf16 %v598_v53  ;;  %v281_v46 = vmul.bf16 %v1039_v60, %v264_v40  ;;  %v258_v47 = vmul.f32 %v739_v41, %v960_v9  ;;  %v741_v63 = vpop.eup %740 }
 0x143   :  { %v602_v26 = vmul.bf16 3216621497, %v1055_v42  ;;  %v251_v55 = vmul.f32 %v741_v63, %v970_v13 }
 0x144   :  { %756 = vrsqrt.f32 %v230_v43  ;;  %v1062_v48 = vadd.bf16 %v1042_v1, %v281_v46  ;;  %v268_v49 = vpack.c.bf16 %v258_v47, %v257_v62 }
 0x145   :  { %v743_v50 = vpop.eup %742  ;;  %758 = vpow.bf16 %v602_v26 }
 0x146   :  { %v745_v51 = vpop.eup %744  ;;  %v599_v54 = vmul.bf16 3216621497, %v1062_v48  ;;  %v285_v6 = vmul.bf16 %v1039_v60, %v268_v49  ;;  %v252_v56 = vmul.f32 %v743_v50, %v974_v17 }
 0x147   :  { %v259_v33 = vmul.f32 %v745_v51, %v984_v18 }
 0x148   :  { %760 = vpow.bf16 %v599_v54  ;;  %v1069_v9 = vadd.bf16 %v1042_v1, %v285_v6  ;;  %v265_v31 = vpack.c.bf16 %v252_v56, %v251_v55 }
 0x149   :  { %v747_v57 = vpop.eup %746 }
 0x14a   :  { %v749_v58 = vpop.eup %748  ;;  %v603_v59 = vmul.bf16 3216621497, %v1069_v9  ;;  %v282_v61 = vmul.bf16 %v1039_v60, %v265_v31  ;;  %v260_v36 = vmul.f32 %v747_v57, %v988_v22 }
 0x14b   :  { %v253_v4 = vmul.f32 %v749_v58, %v998_v23 }
 0x14c   :  { %762 = vpow.bf16 %v603_v59  ;;  %v1076_v13 = vadd.bf16 %v1042_v1, %v282_v61  ;;  %v269_v17 = vpack.c.bf16 %v260_v36, %v259_v33  ;;  %v1105_v61 = vld [vmem:[%s1191_s4] ss:$0 sm:$0xff] }
 0x14d   :  { %v751_v37 = vpop.eup %750 }
 0x14e   :  { %v753_v0 = vpop.eup %752  ;;  %v600_v2 = vmul.bf16 3216621497, %v1076_v13  ;;  %v286_v3 = vmul.bf16 %v1039_v60, %v269_v17  ;;  %v254_v5 = vmul.f32 %v751_v37, %v1002_v27 }
 0x14f   :  { %v261_v10 = vmul.f32 %v753_v0, %v1012_v28 }
 0x150   :  { %v755_v7 = vpop.eup %754  ;;  %764 = vpow.bf16 %v600_v2  ;;  %v303_v18 = vadd.bf16 %v1042_v1, %v286_v3  ;;  %v266_v22 = vpack.c.bf16 %v254_v5, %v253_v4 }
 0x151   :  { %v757_v8 = vpop.eup %756  ;;  %v337_v44 = vadd.bf16 1065369472, %v755_v7 }
 0x152   :  { %v262_v11 = vmul.f32 %v757_v8, %v1016_v32  ;;  %v604_v12 = vmul.bf16 3216621497, %v303_v18  ;;  %v283_v14 = vmul.bf16 %v1039_v60, %v266_v22 }
 0x153   :  { %v759_v52 = vpop.eup %758  ;;  %766 = vrcp.bf16 %v337_v44 }
 0x154   :  { %v341_v15 = vadd.bf16 1065369472, %v759_v52  ;;  %768 = vpow.bf16 %v604_v12  ;;  %v300_v23 = vadd.bf16 %v1042_v1, %v283_v14  ;;  %v270_v27 = vpack.c.bf16 %v262_v11, %v261_v10 }
 0x156   :  { %v761_v19 = vpop.eup %760  ;;  %770 = vrcp.bf16 %v341_v15  ;;  %v601_v20 = vmul.bf16 3216621497, %v300_v23  ;;  %v287_v24 = vmul.bf16 %v1039_v60, %v270_v27 }
 0x157   :  { %v338_v25 = vadd.bf16 1065369472, %v761_v19 }
 0x158   :  { %772 = vpow.bf16 %v601_v20  ;;  %v304_v28 = vadd.bf16 %v1042_v1, %v287_v24 }
 0x159   :  { %774 = vrcp.bf16 %v338_v25 }
 0x15a   :  { %v763_v32 = vpop.eup %762  ;;  %v605_v29 = vmul.bf16 3216621497, %v304_v28 }
 0x15b   :  { %v342_v30 = vadd.bf16 1065369472, %v763_v32 }
 0x15c   :  { %776 = vpow.bf16 %v605_v29 }
 0x15d   :  { %778 = vrcp.bf16 %v342_v30 }
 0x15e   :  { %v765_v34 = vpop.eup %764 }
 0x15f   :  { %v339_v35 = vadd.bf16 1065369472, %v765_v34 }
 0x161   :  { %v767_v53 = vpop.eup %766  ;;  %780 = vrcp.bf16 %v339_v35 }
 0x162   :  { %v769_v38 = vpop.eup %768  ;;  %v346_v21 = vmul.bf16 1065369472, %v767_v53 }
 0x163   :  { %v343_v45 = vadd.bf16 1065369472, %v769_v38 }
 0x164   :  { %v771_v39 = vpop.eup %770  ;;  %v361_v60 = vmul.bf16 %v346_v21, %v1048_v16 }
 0x165   :  { %v354_v40 = vmul.bf16 1065369472, %v771_v39  ;;  %782 = vrcp.bf16 %v343_v45 }
 0x166   :  { %v773_v41 = vpop.eup %772  ;;  %702 = vmatprep.mubr.msk.bf16.mxu0 %vm54_vm0, %v361_v60 }
 0x167   :  { %v775_v1 = vpop.eup %774  ;;  %v365_v62 = vmul.bf16 %v354_v40, %v1055_v42  ;;  %v340_v43 = vadd.bf16 1065369472, %v773_v41 }
 0x168   :  { %v348_v46 = vmul.bf16 1065369472, %v775_v1 }
 0x169   :  { %710 = vmatprep.mubr.msk.bf16.mxu1 %vm54_vm0, %v365_v62  ;;  %784 = vrcp.bf16 %v340_v43 }
 0x16a   :  { %v777_v47 = vpop.eup %776  ;;  %v362_v63 = vmul.bf16 %v348_v46, %v1062_v48 }
 0x16b   :  { %v779_v26 = vpop.eup %778  ;;  %v344_v49 = vadd.bf16 1065369472, %v777_v47 }
 0x16c   :  { %703 = vmatmul.mubr.msk.bf16.vlgmr.msra.gmra.mxu0 %vm54_vm0, %v362_v63  ;;  %v356_v16 = vmul.bf16 1065369472, %v779_v26 }
 0x16d   :  { %786 = vrcp.bf16 %v344_v49 }
 0x16e   :  { %v366_v50 = vmul.bf16 %v356_v16, %v1069_v9 }
 0x16f   :  { %v781_v51 = vpop.eup %780 }
 0x170   :  { %711 = vmatmul.mubr.msk.bf16.vlgmr.msra.gmra.mxu1 %vm54_vm0, %v366_v50  ;;  %v350_v42 = vmul.bf16 1065369472, %v781_v51 }
 0x172   :  { %v363_v54 = vmul.bf16 %v350_v42, %v1076_v13 }
 0x173   :  { %v783_v6 = vpop.eup %782 }
 0x174   :  { %706 = vmatprep.mubr.msk.bf16.mxu0 %vm54_vm0, %v363_v54  ;;  %v358_v55 = vmul.bf16 1065369472, %v783_v6 }
 0x176   :  { %v367_v56 = vmul.bf16 %v358_v55, %v303_v18 }
 0x177   :  { %v785_v48 = vpop.eup %784 }
 0x178   :  { %714 = vmatprep.mubr.msk.bf16.mxu1 %vm54_vm0, %v367_v56  ;;  %v352_v31 = vmul.bf16 1065369472, %v785_v48 }
 0x17a   :  { %v364_v57 = vmul.bf16 %v352_v31, %v300_v23 }
 0x17b   :  { %v787_v58 = vpop.eup %786 }
 0x17c   :  { %707 = vmatmul.mubr.msk.bf16.gmra.mxu0 %vm54_vm0, %v364_v57  ;;  %v360_v9 = vmul.bf16 1065369472, %v787_v58 }
 0x17e   :  { %v368_v59 = vmul.bf16 %v360_v9, %v304_v28 }
 0x180   :  { %715 = vmatmul.mubr.msk.bf16.gmra.mxu1 %vm54_vm0, %v368_v59 }
 0x22c   :  { %v704_v33 = vpop.f32.mrf.mxu0 }
 0x22d   :  { %v459_v36 = vadd.f32 %v704_v33, %v1105_v61 }
 0x22e   :  { %v450_v13 = vpop.f32.mrf.mxu0 }
 0x22f   :  { %v635_v17 = vpack.c.bf16 %v459_v36, %v459_v36  ;;  %v451_v37 = vadd.f32 %v1105_v61, %v450_v13 }
 0x230   :  { %v705_v0 = vpop.f32.mrf.mxu0  ;;  %v712_v2 = vpop.f32.mrf.mxu1 }
 0x231   :  { %580 = vst.msk [vmem:[%s1192_s5 + $0x8] sm:$0xf] %vm577_vm1, %v635_v17  ;;  %v633_v3 = vpack.c.bf16 %v451_v37, %v451_v37  ;;  %v462_v4 = vadd.f32 %v705_v0, %v1105_v61  ;;  %v491_v5 = vadd.f32 %v712_v2, %v1105_v61 }
 0x232   :  { %v453_v7 = vpop.f32.mrf.mxu0  ;;  %v482_v18 = vpop.f32.mrf.mxu1 }
 0x233   :  { %578 = vst.msk [vmem:[%s1192_s5] sm:$0xf] %vm577_vm1, %v633_v3  ;;  %v636_v22 = vpack.c.bf16 %v462_v4, %v462_v4  ;;  %v643_v8 = vpack.c.bf16 %v491_v5, %v491_v5  ;;  %v454_v44 = vadd.f32 %v1105_v61, %v453_v7  ;;  %v483_v10 = vadd.f32 %v1105_v61, %v482_v18 }
 0x234   :  { %v713_v11 = vpop.f32.mrf.mxu1 }
 0x235   :  { %581 = vst.msk [vmem:[%s1192_s5 + $0xc] sm:$0xf] %vm577_vm1, %v636_v22  ;;  %588 = vst.msk [vmem:[%s1192_s5 + $0x28] sm:$0xf] %vm577_vm1, %v643_v8  ;;  %v634_v12 = vpack.c.bf16 %v454_v44, %v454_v44  ;;  %v641_v14 = vpack.c.bf16 %v483_v10, %v483_v10  ;;  %v494_v52 = vadd.f32 %v713_v11, %v1105_v61 }
 0x236   :  { %v485_v15 = vpop.f32.mrf.mxu1 }
 0x237   :  { %579 = vst.msk [vmem:[%s1192_s5 + $0x4] sm:$0xf] %vm577_vm1, %v634_v12  ;;  %586 = vst.msk [vmem:[%s1192_s5 + $0x20] sm:$0xf] %vm577_vm1, %v641_v14  ;;  %v644_v23 = vpack.c.bf16 %v494_v52, %v494_v52  ;;  %v486_v27 = vadd.f32 %v1105_v61, %v485_v15 }
 0x239   :  { %589 = vst.msk [vmem:[%s1192_s5 + $0x2c] sm:$0xf] %vm577_vm1, %v644_v23  ;;  %v642_v19 = vpack.c.bf16 %v486_v27, %v486_v27 }
 0x23b   :  { %587 = vst.msk [vmem:[%s1192_s5 + $0x24] sm:$0xf] %vm577_vm1, %v642_v19 }
 0x23c   :  { %v708_v20 = vpop.f32.mrf.mxu0 }
 0x23d   :  { %v475_v24 = vadd.f32 %v708_v20, %v1105_v61 }
 0x23e   :  { %v466_v25 = vpop.f32.mrf.mxu0 }
 0x23f   :  { %v639_v28 = vpack.c.bf16 %v475_v24, %v475_v24  ;;  %v467_v32 = vadd.f32 %v1105_v61, %v466_v25 }
 0x240   :  { %v709_v29 = vpop.f32.mrf.mxu0  ;;  %v716_v30 = vpop.f32.mrf.mxu1 }
 0x241   :  { %584 = vst.msk [vmem:[%s1192_s5 + $0x18] sm:$0xf] %vm577_vm1, %v639_v28  ;;  %v637_v34 = vpack.c.bf16 %v467_v32, %v467_v32  ;;  %v478_v35 = vadd.f32 %v709_v29, %v1105_v61  ;;  %v507_v53 = vadd.f32 %v716_v30, %v1105_v61 }
 0x242   :  { %v469_v38 = vpop.f32.mrf.mxu0  ;;  %v498_v21 = vpop.f32.mrf.mxu1 }
 0x243   :  { %582 = vst.msk [vmem:[%s1192_s5 + $0x10] sm:$0xf] %vm577_vm1, %v637_v34  ;;  %v640_v45 = vpack.c.bf16 %v478_v35, %v478_v35  ;;  %v647_v39 = vpack.c.bf16 %v507_v53, %v507_v53  ;;  %v470_v60 = vadd.f32 %v1105_v61, %v469_v38  ;;  %v499_v40 = vadd.f32 %v1105_v61, %v498_v21 }
 0x244   :  { %v717_v41 = vpop.f32.mrf.mxu1 }
 0x245   :  { %585 = vst.msk [vmem:[%s1192_s5 + $0x1c] sm:$0xf] %vm577_vm1, %v640_v45  ;;  %592 = vst.msk [vmem:[%s1192_s5 + $0x38] sm:$0xf] %vm577_vm1, %v647_v39  ;;  %v638_v1 = vpack.c.bf16 %v470_v60, %v470_v60  ;;  %v645_v62 = vpack.c.bf16 %v499_v40, %v499_v40  ;;  %v510_v43 = vadd.f32 %v717_v41, %v1105_v61 }
 0x246   :  { %v501_v46 = vpop.f32.mrf.mxu1 }
 0x247   :  { %583 = vst.msk [vmem:[%s1192_s5 + $0x14] sm:$0xf] %vm577_vm1, %v638_v1  ;;  %590 = vst.msk [vmem:[%s1192_s5 + $0x30] sm:$0xf] %vm577_vm1, %v645_v62  ;;  %v648_v47 = vpack.c.bf16 %v510_v43, %v510_v43  ;;  %v502_v63 = vadd.f32 %v1105_v61, %v501_v46 }
 0x249   :  { %593 = vst.msk [vmem:[%s1192_s5 + $0x3c] sm:$0xf] %vm577_vm1, %v648_v47  ;;  %v646_v26 = vpack.c.bf16 %v502_v63, %v502_v63 }
 0x24b   :  { %591 = vst.msk [vmem:[%s1192_s5 + $0x34] sm:$0xf] %vm577_vm1, %v646_v26 }

</bundles_post_ra>
